<compile_context>
chip_gen: v7x
topology: tpu7x:2x2x1
jax: 0.10.0
libtpu: 0.0.40
codegen_flags: <defaults>
</compile_context>

<pallas_src>
import functools

import jax
import jax.numpy as jnp
from jax.experimental import pallas as pl
from jax.experimental.pallas import tpu as pltpu

_LANE = 128


def _rhs_kernel(xa_ref, rep_ref, tile_ref, w_ref, o_ref):
    """out^T = W^T @ kron(x_aug, x_aug)^T for one lane-dense batch tile."""
    xa = xa_ref[...]                                               # (m, tb)
    # kron(x_aug, x_aug)^T[i*m+j, b] = x_aug[b, i] * x_aug[b, j]
    x_rep = jnp.dot(rep_ref[...], xa,
                    preferred_element_type=jnp.float32)            # (m*m, tb)
    x_tile = jnp.dot(tile_ref[...], xa,
                     preferred_element_type=jnp.float32)           # (m*m, tb)
    z = (x_rep * x_tile).astype(w_ref.dtype)                       # (m*m, tb)
    out = jnp.dot(w_ref[...], z, preferred_element_type=jnp.float32)
    o_ref[...] = out.astype(o_ref.dtype)                           # (n, tb)


def _round_up(v, d):
    return (v + d - 1) // d * d


def _xla_forward(x, A, H, B_vec, b_term):
    """Plain-XLA path, also used as the small-batch fallback."""
    n = A.shape[0]
    z = (x[:, :, None] * x[:, None, :]).reshape(x.shape[0], n * n)
    out = x @ A.T + z @ H.T
    if b_term:
        out = out + B_vec.T
    return out


@functools.partial(
    jax.jit,
    static_argnames=("b_term", "block_batch", "min_pallas_batch",
                     "compute_dtype"))
def model_forward(x, t, A, H, B_vec, *, b_term=True, block_batch=4096,
                  min_pallas_batch=1024, compute_dtype=jnp.bfloat16):
    """Pallas equivalent of ModelHypothesis.forward(x, t)."""
    del t  # the PyTorch forward ignores t
    batch, n = x.shape
    assert A.shape == (n, n)
    assert H.shape == (n, n * n)
    assert B_vec.shape == (n, 1)

    if batch < min_pallas_batch:
        # Launch overhead (>~1 us) dwarfs the compute at tiny batch; let XLA
        # fuse it into the caller.  Fuse RK stages / time steps / trajectories
        # into the batch dimension to hit the Pallas path.
        return _xla_forward(x, A, H, B_vec, b_term)

    m = n + 1
    cdt = compute_dtype

    # ---- wrapper-side precompute (plain XLA, traced once under jit) ------
    # Fused weight W^T[k, i*m + j]:
    #   i<n, j<n : H[k, i*n + j]   (quadratic term)
    #   i<n, j=n : A[k, i]         (linear term, via x_i * 1)
    #   i=n, j=n : B[k]            (bias, via 1 * 1)          [if b_term]
    Wq = jnp.zeros((n, m, m), jnp.float32)
    Wq = Wq.at[:, :n, :n].set(H.astype(jnp.float32).reshape(n, n, n))
    Wq = Wq.at[:, :n, n].set(A.astype(jnp.float32))
    if b_term:
        Wq = Wq.at[:, n, n].set(B_vec.astype(jnp.float32)[:, 0])
    W_T = Wq.reshape(n, m * m).astype(cdt)                         # (n, m*m)

    # Constant 0/1 selection matrices (exact in bf16) for the kron build:
    #   (R^T @ xa^T)[i*m+j, b] = x_aug[b, i]   (repeat pattern)
    #   (T^T @ xa^T)[i*m+j, b] = x_aug[b, j]   (tile pattern)
    eye_m = jnp.eye(m, dtype=jnp.float32)
    ones_col = jnp.ones((m, 1), jnp.float32)
    R_T = jnp.kron(eye_m, ones_col).astype(cdt)                    # (m*m, m)
    T_T = jnp.kron(ones_col, eye_m).astype(cdt)                    # (m*m, m)

    # Feature-major input: x_aug^T = [x | 1]^T with batch on the lane axis.
    xa_t = jnp.concatenate(
        [x.astype(cdt).T, jnp.ones((1, batch), cdt)], axis=0)      # (m, batch)

    # Batch tile: multiple of 128 lanes; cap at half the (lane-rounded) batch
    # so large batches always give >= 2 grid steps (v7x megacore), and at
    # block_batch to amortize the ~0.35 us/step overhead while staying a few
    # MiB of VMEM.
    pb0 = _round_up(batch, _LANE)
    tb = min(block_batch, max(_LANE, _round_up(-(-pb0 // 2), _LANE)))
    pb = _round_up(batch, tb)
    if pb != batch:
        xa_t = jnp.pad(xa_t, ((0, 0), (0, pb - batch)))

    out_t = pl.pallas_call(
        _rhs_kernel,
        out_shape=jax.ShapeDtypeStruct((n, pb), x.dtype),
        grid=(pb // tb,),
        in_specs=[
            pl.BlockSpec((m, tb), lambda b: (0, b)),        # streamed batch tile
            pl.BlockSpec((m * m, m), lambda b: (0, 0)),     # R^T   (resident)
            pl.BlockSpec((m * m, m), lambda b: (0, 0)),     # T^T   (resident)
            pl.BlockSpec((n, m * m), lambda b: (0, 0)),     # fused W^T (resident)
        ],
        out_specs=pl.BlockSpec((n, tb), lambda b: (0, b)),
        compiler_params=pltpu.CompilerParams(
            dimension_semantics=("parallel",)),
    )(xa_t, R_T, T_T, W_T)
    return out_t[:, :batch].T                                      # (batch, n)


if __name__ == "__main__":
    sys_order = 8
    n_traj = 4
    n_fused_evals = 512   # RK stages x time steps fused into the batch dim
    batch = n_traj * n_fused_evals
    fac = 10.0

    key = jax.random.PRNGKey(0)
    k_a, k_h, k_b, k_x, k_xs = jax.random.split(key, 5)

    # Parameter shapes follow the PyTorch __init__ (A: (n,n) randn/fac,
    # H: (n, n*n), B: (n,1)).  Nonzero H/B so those paths are exercised.
    A = jax.random.normal(k_a, (sys_order, sys_order), jnp.float32) / fac
    H = jax.random.normal(k_h, (sys_order, sys_order * sys_order),
                          jnp.float32) / fac
    B_vec = jax.random.normal(k_b, (sys_order, 1), jnp.float32) / fac

    x = jax.random.normal(k_x, (batch, sys_order), jnp.float32)
    t = jnp.float32(0.0)

    ref = _xla_forward(x, A, H, B_vec, True)

    # f32 operands: tight parity with the reference.
    out_f32 = jax.block_until_ready(
        model_forward(x, t, A, H, B_vec, b_term=True,
                      compute_dtype=jnp.float32))
    assert out_f32.shape == (batch, sys_order)
    assert jnp.allclose(out_f32, ref, atol=1e-4, rtol=1e-4)

    # Default bf16 operands (f32 accumulation): fast path, relaxed tolerance.
    out_bf16 = jax.block_until_ready(
        model_forward(x, t, A, H, B_vec, b_term=True))
    rel_err = jnp.linalg.norm(out_bf16 - ref) / jnp.linalg.norm(ref)
    assert rel_err < 2e-2

    # Tiny batch takes the XLA fallback (launch overhead >> compute there).
    x_small = jax.random.normal(k_xs, (4, sys_order), jnp.float32)
    out_small = jax.block_until_ready(
        model_forward(x_small, t, A, H, B_vec, b_term=True))
    ref_small = _xla_forward(x_small, A, H, B_vec, True)
    assert out_small.shape == (4, sys_order)
    assert jnp.allclose(out_small, ref_small, atol=1e-5, rtol=1e-5)

    print("KERNEL_OK")
</pallas_src>

<mosaic_0001>
module attributes {stable_mosaic.version = 11 : i64} {
  func.func @_rhs_kernel(%arg0: i32, %arg1: memref<9x1024xf32, #tpu.memory_space<vmem>>, %arg2: memref<81x9xf32, #tpu.memory_space<vmem>>, %arg3: memref<81x9xf32, #tpu.memory_space<vmem>>, %arg4: memref<8x81xf32, #tpu.memory_space<vmem>>, %arg5: memref<8x1024xf32, #tpu.memory_space<vmem>>) attributes {dimension_semantics = [#tpu.dimension_semantics<parallel>], iteration_bounds = array<i64: 2>, scalar_prefetch = 0 : i64, scratch_operands = 0 : i64, tpu.core_type = #tpu.core_type<tc>, window_params = [{transform_indices = @transform_0, window_bounds = array<i64: 9, 1024>}, {pipeline_mode = #tpu.pipeline_mode<synchronous>, transform_indices = @transform_1, window_bounds = array<i64: 81, 9>}, {pipeline_mode = #tpu.pipeline_mode<synchronous>, transform_indices = @transform_2, window_bounds = array<i64: 81, 9>}, {pipeline_mode = #tpu.pipeline_mode<synchronous>, transform_indices = @transform_3, window_bounds = array<i64: 8, 81>}, {transform_indices = @transform_4, window_bounds = array<i64: 8, 1024>}]} {
    %c0 = arith.constant 0 : index
    %c0_0 = arith.constant 0 : index
    %0 = vector.load %arg1[%c0, %c0_0] : memref<9x1024xf32, #tpu.memory_space<vmem>>, vector<9x1024xf32>
    %c0_1 = arith.constant 0 : index
    %c0_2 = arith.constant 0 : index
    %1 = vector.load %arg2[%c0_1, %c0_2] : memref<81x9xf32, #tpu.memory_space<vmem>>, vector<81x9xf32>
    %cst = arith.constant dense<0.000000e+00> : vector<81x1024xf32>
    %2 = tpu.matmul %1, %0, %cst {dimension_numbers = #tpu.dot_dimension_numbers<[1], [0], [0], [1], [0, 0, 1, 1], [], []>} : vector<81x9xf32>, vector<9x1024xf32>, vector<81x1024xf32> -> vector<81x1024xf32>
    %c0_3 = arith.constant 0 : index
    %c0_4 = arith.constant 0 : index
    %3 = vector.load %arg3[%c0_3, %c0_4] : memref<81x9xf32, #tpu.memory_space<vmem>>, vector<81x9xf32>
    %cst_5 = arith.constant dense<0.000000e+00> : vector<81x1024xf32>
    %4 = tpu.matmul %3, %0, %cst_5 {dimension_numbers = #tpu.dot_dimension_numbers<[1], [0], [0], [1], [0, 0, 1, 1], [], []>} : vector<81x9xf32>, vector<9x1024xf32>, vector<81x1024xf32> -> vector<81x1024xf32>
    %5 = arith.mulf %2, %4 : vector<81x1024xf32>
    %c0_6 = arith.constant 0 : index
    %c0_7 = arith.constant 0 : index
    %6 = vector.load %arg4[%c0_6, %c0_7] : memref<8x81xf32, #tpu.memory_space<vmem>>, vector<8x81xf32>
    %cst_8 = arith.constant dense<0.000000e+00> : vector<8x1024xf32>
    %7 = tpu.matmul %6, %5, %cst_8 {dimension_numbers = #tpu.dot_dimension_numbers<[1], [0], [0], [1], [0, 0, 1, 1], [], []>} : vector<8x81xf32>, vector<81x1024xf32>, vector<8x1024xf32> -> vector<8x1024xf32>
    %c0_9 = arith.constant 0 : index
    %c0_10 = arith.constant 0 : index
    %8 = vector.load %arg5[%c0_9, %c0_10] : memref<8x1024xf32, #tpu.memory_space<vmem>>, vector<8x1024xf32>
    tpu.vector_store %arg5[%c0_9, %c0_10], %7 {strides = array<i32>} : memref<8x1024xf32, #tpu.memory_space<vmem>>, vector<8x1024xf32>,
    return
  }
  func.func @transform_0(%arg0: i32) -> (i32, i32) {
    %c0_i32 = arith.constant 0 : i32
    %c0_i32_0 = arith.constant 0 : i32
    return %c0_i32, %arg0 : i32, i32
  }
  func.func @transform_1(%arg0: i32) -> (i32, i32) {
    %c0_i32 = arith.constant 0 : i32
    %c0_i32_0 = arith.constant 0 : i32
    %c0_i32_1 = arith.constant 0 : i32
    return %c0_i32, %c0_i32_0 : i32, i32
  }
  func.func @transform_2(%arg0: i32) -> (i32, i32) {
    %c0_i32 = arith.constant 0 : i32
    %c0_i32_0 = arith.constant 0 : i32
    %c0_i32_1 = arith.constant 0 : i32
    return %c0_i32, %c0_i32_0 : i32, i32
  }
  func.func @transform_3(%arg0: i32) -> (i32, i32) {
    %c0_i32 = arith.constant 0 : i32
    %c0_i32_0 = arith.constant 0 : i32
    %c0_i32_1 = arith.constant 0 : i32
    return %c0_i32, %c0_i32_0 : i32, i32
  }
  func.func @transform_4(%arg0: i32) -> (i32, i32) {
    %c0_i32 = arith.constant 0 : i32
    %c0_i32_0 = arith.constant 0 : i32
    return %c0_i32, %arg0 : i32, i32
  }
}

</mosaic_0001>

<bundles_post_ra>
// kernel: model_forward.1
= control target key start
LH: loop header
LB: loop body
LE: loop exit
PB: predicated region body
PF: predicated region fallthrough
CT: control target
= control target key end

     0   :  { %9 = vsyncpa [#allocation4], 0  ;;  %s3040_s0 = inlined_call_operand.vmem [shape: f32[9,2048], index: 0, kind: input, shape index: {}]   ;;  %s3041_s1 = inlined_call_operand.vmem [shape: f32[81,9], index: 1, kind: input, shape index: {}]   ;;  %s3042_s2 = inlined_call_operand.vmem [shape: f32[81,9], index: 2, kind: input, shape index: {}]   ;;  %s3043_s3 = inlined_call_operand.vmem [shape: f32[8,81], index: 3, kind: input, shape index: {}]   ;;  %s3044_s4 = inlined_call_operand.hbm [shape: f32[8,2048], index: 4, kind: output, shape index: {}]  }
   0x1   :  { %11 = vsyncpa [#allocation4 + $0x1], 0  ;;  %s2308_s15 = smov 0   ;;  %s2310_s16 = smov 0  }
   0x2   :  { %s2312_s17 = smov 0   ;;  %s2314_s18 = smov 0  }
   0x3 LB: > { %s1914_s19 = sadd.s32 4294967295, %s2278_s18   ;;  %s1915_s20 = sadd.s32 4294967294, %s2278_s18   ;;  %s2278_s18 = sphi %s2314_s18, %s3137_s18   ;;  %s2274_s17 = sphi %s2312_s17, %s3136_s17   ;;  %s2270_s16 = sphi %s2310_s16, %s3135_s16   ;;  %s2266_s15 = sphi %s2308_s15, %s3134_s15  }
   0x4   : > { %s2331_s21 = sadd.s32 1, %s2278_s18   ;;  %s24_s22 = sadd.s32 1, %s2274_s17 }
   0x5   : > { %s21_s23 = ssub.s32 %s2278_s18, %s2331_s21  ;;  %p31_p0 = scmp.ne.s32.totalorder %s2274_s17, %s2270_s16 }
   0x6   : > { %p22_p1 = scmp.eq.s32.totalorder %s21_s23, 0  ;;  %p32_p2 = scmp.eq.s32.totalorder %s2278_s18, 0 }
   0x7   : > { %p124_p3 = scmp.eq.s32.totalorder %s1914_s19, 1  ;;  %p129_p4 = scmp.ne.s32.totalorder %s2270_s16, %s2266_s15 }
   0x8   : > { %s2344_s24 = scalar_select %p22_p1, %s2274_s17, %s24_s22  }
   0x9   : > { %p33_p5 = por %p32_p2, %p31_p0  ;;  %p2346_p6 = por %p124_p3, %p31_p0 }
   0xa   : > { %p130_p7 = scmp.eq.s32.totalorder %s1915_s20, 1  ;;  %p1917_p9 = scmp.ge.s32.totalorder %s2278_s18, 2 }
   0xc   : > { %p2350_p8 = por %p130_p7, %p129_p4  ;;  %155 = sbr.rel (%p1917_p9) target bundleno = 31 (0x1f), region = 28 }
  0x13   : > { %158 = sbr.rel (!%p33_p5) target bundleno = 31 (0x1f), region = 32  ;;  %s160_s27 = sand.u32 (%p33_p5), 1, %s2274_s17  }
  0x14   : > { %s2045_s28 = sshll.u32 (%p33_p5), %s2278_s18, 6  ;;  %s1918_s29 = sshll.u32 (%p33_p5), %s160_s27, 7 }
  0x15   : > { %s2362_s6 = scalar_lea.vmem (%p33_p5), %s3040_s0, %s2045_s28  ;;  %s162_s7 = scalar_lea.vmem (%p33_p5), [#allocation2], %s1918_s29 }
  0x16   : > { %v178_v0 = vld [vmem:[%s2362_s6] sm:$0xff] (%p33_p5)  ;;  %v180_v1 = vld [vmem:[%s2362_s6 + $0x8] sm:$0xff] (%p33_p5)  ;;  %v182_v2 = vld [vmem:[%s2362_s6 + $0x10] sm:$0xff] (%p33_p5) }
  0x17   : > { %179 = vst [vmem:[%s162_s7] sm:$0xff] (%p33_p5), %v178_v0  ;;  %181 = vst [vmem:[%s162_s7 + $0x8] sm:$0xff] (%p33_p5), %v180_v1  ;;  %v184_v3 = vld [vmem:[%s2362_s6 + $0x18] sm:$0xff] (%p33_p5)  ;;  %v186_v4 = vld [vmem:[%s2362_s6 + $0x20] sm:$0xff] (%p33_p5) }
  0x18   : > { %183 = vst [vmem:[%s162_s7 + $0x10] sm:$0xff] (%p33_p5), %v182_v2  ;;  %v188_v5 = vld [vmem:[%s2362_s6 + $0x28] sm:$0xff] (%p33_p5)  ;;  %185 = vst [vmem:[%s162_s7 + $0x18] sm:$0xff] (%p33_p5), %v184_v3  ;;  %v190_v6 = vld [vmem:[%s2362_s6 + $0x30] sm:$0xff] (%p33_p5) }
  0x19   : > { %187 = vst [vmem:[%s162_s7 + $0x20] sm:$0xff] (%p33_p5), %v186_v4  ;;  %189 = vst [vmem:[%s162_s7 + $0x28] sm:$0xff] (%p33_p5), %v188_v5  ;;  %v192_v7 = vld [vmem:[%s2362_s6 + $0x38] sm:$0xff] (%p33_p5)  ;;  %v194_v8 = vld [vmem:[%s2362_s6 + $0x80] sm:$0xff] (%p33_p5) }
  0x1a   : > { %191 = vst [vmem:[%s162_s7 + $0x30] sm:$0xff] %v190_v6  ;;  %193 = vst [vmem:[%s162_s7 + $0x38] sm:$0xff] %v192_v7  ;;  %v196_v9 = vld [vmem:[%s2362_s6 + $0x88] sm:$0xff]  ;;  %v198_v10 = vld [vmem:[%s2362_s6 + $0x90] sm:$0xff] }
  0x1b   : > { %195 = vst [vmem:[%s162_s7 + $0x40] sm:$0xff] %v194_v8  ;;  %v200_v11 = vld [vmem:[%s2362_s6 + $0x98] sm:$0xff]  ;;  %197 = vst [vmem:[%s162_s7 + $0x48] sm:$0xff] %v196_v9  ;;  %v202_v12 = vld [vmem:[%s2362_s6 + $0xa0] sm:$0xff] }
  0x1c   : > { %199 = vst [vmem:[%s162_s7 + $0x50] sm:$0xff] %v198_v10  ;;  %201 = vst [vmem:[%s162_s7 + $0x58] sm:$0xff] %v200_v11  ;;  %v204_v13 = vld [vmem:[%s2362_s6 + $0xa8] sm:$0xff]  ;;  %v206_v14 = vld [vmem:[%s2362_s6 + $0xb0] sm:$0xff] }
  0x1d   : > { %203 = vst [vmem:[%s162_s7 + $0x60] sm:$0xff] %v202_v12  ;;  %205 = vst [vmem:[%s162_s7 + $0x68] sm:$0xff] %v204_v13  ;;  %v208_v15 = vld [vmem:[%s2362_s6 + $0xb8] sm:$0xff] }
  0x1e   : > { %207 = vst [vmem:[%s162_s7 + $0x70] sm:$0xff] %v206_v14  ;;  %209 = vst [vmem:[%s162_s7 + $0x78] sm:$0xff] %v208_v15 }
  0x1f PF: > { %p1921_p10 = scmp.ge.s32.totalorder %s2278_s18, 1  ;;  %p214_p11 = scmp.lt.s32.totalorder %s2278_s18, 3 }
  0x21   : > { %p215_p12 = pnand %p1921_p10, %p214_p11 }
  0x23   : > { %218 = sbr.rel (%p215_p12) target bundleno = 672 (0x2a0), region = 55 }
  0x2a   : > { %s2383_s8 = sand.u32 1, %s2270_s16   ;;  %vm309_vm0 = vcmask 1040384   ;;  %v3045_v16 = vmov 0.0   ;;  %vm2281_vm1 = vmmov 1   ;;  %v2398_v29 = vld [vmem:[%s3041_s1] sm:$0xff]  ;;  %vm275_vm3 = vcmask 72704  }
  0x2b   : > { %s1922_s9 = sshll.u32 %s2383_s8, 7  ;;  %398 = vmatprep.mubr.f32.mxu0 %v3045_v16  ;;  %529 = vmatprep.mubr.f32.mxu1 %v3045_v16  ;;  %vm2389_vm2 = vmpackc.low %vm309_vm0, %vm2281_vm1  ;;  %v2436_v43 = vld [vmem:[%s3041_s1 + $0x8] sm:$0xff]  ;;  %v266_v44 = vld [vmem:[%s3041_s1 + $0x10] sm:$0xff]  ;;  %vm1515_vm4 = vcmask 662528   ;;  %s2046_s11 = sshll.u32 %s1914_s19, 10 }
  0x2c   : > { %s223_s10 = scalar_lea.vmem [#allocation2], %s1922_s9  ;;  %v267_v45 = vld [vmem:[%s3041_s1 + $0x18] sm:$0xff]  ;;  %v268_v46 = vld [vmem:[%s3041_s1 + $0x20] sm:$0xff]  ;;  %v269_v47 = vld [vmem:[%s3041_s1 + $0x28] sm:$0xff]  ;;  %s1923_s9 = sshll.u32 %s2383_s8, 6 }
  0x2d   : > { %v249_v18 = vld [vmem:[%s223_s10 + $0x8] sm:$0xff]  ;;  %v251_v20 = vld [vmem:[%s223_s10 + $0x18] sm:$0xff]  ;;  %v248_v23 = vld [vmem:[%s223_s10] sm:$0xff]  ;;  %s2996_s20 = scalar_lea.hbm %s3044_s4, %s2046_s11  ;;  %s1836_s19 = scalar_lea.sflag [#allocation4], %s2383_s8 }
  0x2e   : > { %v257_v19 = vld [vmem:[%s223_s10 + $0x48] sm:$0x1]  ;;  %v259_v22 = vld [vmem:[%s223_s10 + $0x58] sm:$0x1]  ;;  %v256_v24 = vld [vmem:[%s223_s10 + $0x40] sm:$0x1] }
  0x2f   : > { %v2047_v21 = vpack.c.bf16 %v257_v19, %v249_v18  ;;  %v2053_v25 = vpack.c.bf16 %v259_v22, %v251_v20  ;;  %v2393_v26 = vpack.c.bf16 %v256_v24, %v248_v23  ;;  %v250_v27 = vld [vmem:[%s223_s10 + $0x10] sm:$0xff]  ;;  %v253_v30 = vld [vmem:[%s223_s10 + $0x28] sm:$0xff]  ;;  %v255_v33 = vld [vmem:[%s223_s10 + $0x38] sm:$0xff]  ;;  %s2282_s23 = smov [#allocation3]  }
  0x30   : > { %v258_v28 = vld [vmem:[%s223_s10 + $0x50] sm:$0x1]  ;;  %v261_v32 = vld [vmem:[%s223_s10 + $0x68] sm:$0x1]  ;;  %v263_v34 = vld [vmem:[%s223_s10 + $0x78] sm:$0x1] }
  0x31   : > { %2049 = vmatprep.subr.msk.bf16.mxu0 %vm2389_vm2, %v2047_v21  ;;  %v2402_v31 = vpack.c.bf16 %v258_v28, %v250_v27  ;;  %2055 = vmatprep.subr.msk.bf16.mxu1 %vm2389_vm2, %v2053_v25  ;;  %v2409_v35 = vpack.c.bf16 %v261_v32, %v253_v30  ;;  %v2411_v36 = vpack.c.bf16 %v263_v34, %v255_v33  ;;  %v252_v37 = vld [vmem:[%s223_s10 + $0x20] sm:$0xff]  ;;  %v254_v39 = vld [vmem:[%s223_s10 + $0x30] sm:$0xff]  ;;  %v271_v49 = vld [vmem:[%s3041_s1 + $0x38] sm:$0xff]  ;;  %s2220_s27 = sshll.u32 %s2282_s23, 4  ;;  %s2221_s27 = int_to_ptr.vmem [resolvable:$false] %s2220_s27 }
  0x32   : > { %2052 = vmatpush1.bf16.msk.msra.mxu0 %vm2389_vm2, %v2393_v26  ;;  %v260_v38 = vld [vmem:[%s223_s10 + $0x60] sm:$0x1]  ;;  %v262_v41 = vld [vmem:[%s223_s10 + $0x70] sm:$0x1]  ;;  %v273_v51 = vld [vmem:[%s3041_s1 + $0x48] sm:$0xff]  ;;  %s245_s10 = scalar_lea.vmem [#allocation3], %s1923_s9 }
  0x33   : > { %2058 = vmatpush1.bf16.msk.msra.mxu1 %vm2389_vm2, %v2402_v31  ;;  %v2416_v40 = vpack.c.bf16 %v260_v38, %v252_v37  ;;  %2061 = vmatprep.subr.msk.bf16.mxu0 %vm2389_vm2, %v2409_v35  ;;  %v2424_v42 = vpack.c.bf16 %v262_v41, %v254_v39  ;;  %v270_v48 = vld [vmem:[%s3041_s1 + $0x30] sm:$0xff]  ;;  %v272_v50 = vld [vmem:[%s3041_s1 + $0x40] sm:$0xff]  ;;  %v859_v54 = vld [vmem:[%s3042_s2 + $0x8] sm:$0xff]  ;;  %s1850_s12 = sshll.u32 %s245_s10, 4  ;;  %s2222_s28 = scalar_lea.vmem %s2221_s27, 2048  ;;  %s2998_s12 = int_to_ptr.vmem [resolvable:$true] %s1850_s12 }
  0x34   : > { %2067 = vmatprep.subr.msk.bf16.mxu1 %vm2389_vm2, %v2411_v36  ;;  %v274_v52 = vld [vmem:[%s3041_s1 + $0x50] sm:$0x1]  ;;  %v858_v53 = vld [vmem:[%s3042_s2] sm:$0xff]  ;;  %v861_v56 = vld [vmem:[%s3042_s2 + $0x18] sm:$0xff]  ;;  %s2216_s22 = scalar_lea.vmem %s2998_s12, 1024  ;;  %p2223_p2 = scmp.lt.s32.totalorder %s2998_s12, %s2221_s27 }
  0x35   : > { %1926 = vmatmul.mubr.msk.f32.vlgmr.msra.gmra.mrb[0].mxu0 %vm275_vm3, %v2398_v29  ;;  %v860_v55 = vld [vmem:[%s3042_s2 + $0x10] sm:$0xff]  ;;  %v862_v57 = vld [vmem:[%s3042_s2 + $0x20] sm:$0xff]  ;;  %v863_v58 = vld [vmem:[%s3042_s2 + $0x28] sm:$0xff]  ;;  %p2217_p13 = scmp.ne.s32.totalorder %s2998_s12, %s2216_s22  ;;  %p2224_p3 = scmp.lt.s32.totalorder %s2222_s28, %s2216_s22 }
  0x36   : > { %1939 = vmatmul.mubr.msk.f32.vlgmr.msra.gmra.mrb[0].mxu1 %vm275_vm3, %v2398_v29  ;;  %2064 = vmatpush1.bf16.msk.msra.mxu0 %vm2389_vm2, %v2416_v40  ;;  %v864_v59 = vld [vmem:[%s3042_s2 + $0x30] sm:$0xff]  ;;  %v865_v60 = vld [vmem:[%s3042_s2 + $0x38] sm:$0xff]  ;;  %v866_v61 = vld [vmem:[%s3042_s2 + $0x40] sm:$0xff] }
  0x37   : > { %2070 = vmatpush1.bf16.msk.msra.mxu1 %vm2389_vm2, %v2424_v42  ;;  %404 = vmatprep.mubr.f32.mxu0 %v3045_v16  ;;  %v867_v62 = vld [vmem:[%s3042_s2 + $0x48] sm:$0xff]  ;;  %v868_v63 = vld [vmem:[%s3042_s2 + $0x50] sm:$0x1]  ;;  %p2218_p0 = pnand %p2217_p13, %p2346_p6  ;;  %p2225_p4 = por %p2224_p3, %p2223_p2 }
  0x38   : > { %535 = vmatprep.mubr.f32.mxu1 %v3045_v16  ;;  %2073 = vmatprep.subr.msk.bf16.mxu0 %vm2389_vm2, %v2047_v21 }
  0x39   : > { %1927 = vmatmul.mubr.msk.f32.gmra.mrb[2].mxu0 %vm275_vm3, %v2436_v43  ;;  %2079 = vmatprep.subr.msk.bf16.mxu1 %vm2389_vm2, %v2053_v25  ;;  %p2219_p1 = pneg %p2218_p0 }
  0x3a   : > { %1940 = vmatmul.mubr.msk.f32.gmra.mrb[2].mxu1 %vm275_vm3, %v2436_v43  ;;  %410 = vmatprep.mubr.f32.mxu0 %v3045_v16 }
  0x3b   : > { %541 = vmatprep.mubr.f32.mxu1 %v3045_v16  ;;  %p2226_p5 = pnand %p2225_p4, %p2219_p1 }
  0x3d   : > { %1928 = vmatmul.mubr.msk.f32.gmra.mrb[4].mxu0 %vm275_vm3, %v266_v44 }
  0x3e   : > { %1941 = vmatmul.mubr.msk.f32.gmra.mrb[4].mxu1 %vm275_vm3, %v266_v44  ;;  %416 = vmatprep.mubr.f32.mxu0 %v3045_v16 }
  0x3f   : > { %547 = vmatprep.mubr.f32.mxu1 %v3045_v16 }
  0x41   : > { %1929 = vmatmul.mubr.msk.f32.gmra.mrb[6].mxu0 %vm275_vm3, %v267_v45 }
  0x42   : > { %1942 = vmatmul.mubr.msk.f32.gmra.mrb[6].mxu1 %vm275_vm3, %v267_v45  ;;  %422 = vmatprep.mubr.f32.mxu0 %v3045_v16 }
  0x43   : > { %553 = vmatprep.mubr.f32.mxu1 %v3045_v16 }
  0x45   : > { %1930 = vmatmul.mubr.msk.f32.gmra.mrb[8].mxu0 %vm275_vm3, %v268_v46 }
  0x46   : > { %1943 = vmatmul.mubr.msk.f32.gmra.mrb[8].mxu1 %vm275_vm3, %v268_v46  ;;  %428 = vmatprep.mubr.f32.mxu0 %v3045_v16 }
  0x47   : > { %559 = vmatprep.mubr.f32.mxu1 %v3045_v16 }
  0x49   : > { %1931 = vmatmul.mubr.msk.f32.gmra.mrb[10].mxu0 %vm275_vm3, %v269_v47 }
  0x4a   : > { %1944 = vmatmul.mubr.msk.f32.gmra.mrb[10].mxu1 %vm275_vm3, %v269_v47  ;;  %434 = vmatprep.mubr.f32.mxu0 %v3045_v16 }
  0x4b   : > { %565 = vmatprep.mubr.f32.mxu1 %v3045_v16 }
  0x4d   : > { %1932 = vmatmul.mubr.msk.f32.gmra.mrb[12].mxu0 %vm275_vm3, %v270_v48 }
  0x4e   : > { %1945 = vmatmul.mubr.msk.f32.gmra.mrb[12].mxu1 %vm275_vm3, %v270_v48  ;;  %440 = vmatprep.mubr.f32.mxu0 %v3045_v16 }
  0x4f   : > { %571 = vmatprep.mubr.f32.mxu1 %v3045_v16 }
  0x51   : > { %1933 = vmatmul.mubr.msk.f32.gmra.mrb[14].mxu0 %vm275_vm3, %v271_v49 }
  0x52   : > { %1946 = vmatmul.mubr.msk.f32.gmra.mrb[14].mxu1 %vm275_vm3, %v271_v49  ;;  %446 = vmatprep.mubr.f32.mxu0 %v3045_v16 }
  0x53   : > { %577 = vmatprep.mubr.f32.mxu1 %v3045_v16 }
  0x55   : > { %1934 = vmatmul.mubr.msk.f32.gmra.mrb[16].mxu0 %vm275_vm3, %v272_v50 }
  0x56   : > { %1947 = vmatmul.mubr.msk.f32.gmra.mrb[16].mxu1 %vm275_vm3, %v272_v50  ;;  %452 = vmatprep.mubr.f32.mxu0 %v3045_v16 }
  0x57   : > { %583 = vmatprep.mubr.f32.mxu1 %v3045_v16 }
  0x59   : > { %1935 = vmatmul.mubr.msk.f32.gmra.mrb[18].mxu0 %vm275_vm3, %v273_v51 }
  0x5a   : > { %1948 = vmatmul.mubr.msk.f32.gmra.mrb[18].mxu1 %vm275_vm3, %v273_v51  ;;  %458 = vmatprep.mubr.f32.mxu0 %v3045_v16 }
  0x5b   : > { %589 = vmatprep.mubr.f32.mxu1 %v3045_v16 }
  0x5d   : > { %1936 = vmatmul.mubr.msk.f32.gmra.mrb[20].mxu0 %vm275_vm3, %v274_v52 }
  0x5e   : > { %1949 = vmatmul.mubr.msk.f32.gmra.mrb[20].mxu1 %vm275_vm3, %v274_v52  ;;  %660 = vmatprep.mubr.f32.mxu0 %v3045_v16 }
  0x5f   : > { %791 = vmatprep.mubr.f32.mxu1 %v3045_v16 }
  0x61   : > { %1952 = vmatmul.mubr.msk.f32.vlgmr.msra.gmra.mrb[22].mxu0 %vm275_vm3, %v2398_v29 }
  0x62   : > { %1965 = vmatmul.mubr.msk.f32.vlgmr.msra.gmra.mrb[22].mxu1 %vm275_vm3, %v2398_v29  ;;  %2076 = vmatpush1.bf16.msk.msra.mxu0 %vm2389_vm2, %v2393_v26 }
  0x63   : > { %2082 = vmatpush1.bf16.msk.msra.mxu1 %vm2389_vm2, %v2402_v31  ;;  %666 = vmatprep.mubr.f32.mxu0 %v3045_v16 }
  0x64   : > { %797 = vmatprep.mubr.f32.mxu1 %v3045_v16  ;;  %2085 = vmatprep.subr.msk.bf16.mxu0 %vm2389_vm2, %v2409_v35 }
  0x65   : > { %1953 = vmatmul.mubr.msk.f32.gmra.mrb[24].mxu0 %vm275_vm3, %v2436_v43  ;;  %2091 = vmatprep.subr.msk.bf16.mxu1 %vm2389_vm2, %v2411_v36 }
  0x66   : > { %1966 = vmatmul.mubr.msk.f32.gmra.mrb[24].mxu1 %vm275_vm3, %v2436_v43  ;;  %672 = vmatprep.mubr.f32.mxu0 %v3045_v16 }
  0x67   : > { %803 = vmatprep.mubr.f32.mxu1 %v3045_v16 }
  0x69   : > { %1954 = vmatmul.mubr.msk.f32.gmra.mrb[26].mxu0 %vm275_vm3, %v266_v44 }
  0x6a   : > { %1967 = vmatmul.mubr.msk.f32.gmra.mrb[26].mxu1 %vm275_vm3, %v266_v44  ;;  %678 = vmatprep.mubr.f32.mxu0 %v3045_v16 }
  0x6b   : > { %809 = vmatprep.mubr.f32.mxu1 %v3045_v16 }
  0x6d   : > { %1955 = vmatmul.mubr.msk.f32.gmra.mrb[28].mxu0 %vm275_vm3, %v267_v45 }
  0x6e   : > { %1968 = vmatmul.mubr.msk.f32.gmra.mrb[28].mxu1 %vm275_vm3, %v267_v45  ;;  %684 = vmatprep.mubr.f32.mxu0 %v3045_v16 }
  0x6f   : > { %815 = vmatprep.mubr.f32.mxu1 %v3045_v16 }
  0x71   : > { %1956 = vmatmul.mubr.msk.f32.gmra.mrb[30].mxu0 %vm275_vm3, %v268_v46 }
  0x72   : > { %1969 = vmatmul.mubr.msk.f32.gmra.mrb[30].mxu1 %vm275_vm3, %v268_v46  ;;  %690 = vmatprep.mubr.f32.mxu0 %v3045_v16 }
  0x73   : > { %821 = vmatprep.mubr.f32.mxu1 %v3045_v16 }
  0x75   : > { %1957 = vmatmul.mubr.msk.f32.gmra.mrb[32].mxu0 %vm275_vm3, %v269_v47 }
  0x76   : > { %1970 = vmatmul.mubr.msk.f32.gmra.mrb[32].mxu1 %vm275_vm3, %v269_v47  ;;  %696 = vmatprep.mubr.f32.mxu0 %v3045_v16 }
  0x77   : > { %827 = vmatprep.mubr.f32.mxu1 %v3045_v16 }
  0x79   : > { %1958 = vmatmul.mubr.msk.f32.gmra.mrb[34].mxu0 %vm275_vm3, %v270_v48 }
  0x7a   : > { %1971 = vmatmul.mubr.msk.f32.gmra.mrb[34].mxu1 %vm275_vm3, %v270_v48  ;;  %702 = vmatprep.mubr.f32.mxu0 %v3045_v16 }
  0x7b   : > { %833 = vmatprep.mubr.f32.mxu1 %v3045_v16 }
  0x7d   : > { %1959 = vmatmul.mubr.msk.f32.gmra.mrb[36].mxu0 %vm275_vm3, %v271_v49 }
  0x7e   : > { %1972 = vmatmul.mubr.msk.f32.gmra.mrb[36].mxu1 %vm275_vm3, %v271_v49  ;;  %708 = vmatprep.mubr.f32.mxu0 %v3045_v16 }
  0x7f   : > { %839 = vmatprep.mubr.f32.mxu1 %v3045_v16 }
  0x81   : > { %1960 = vmatmul.mubr.msk.f32.gmra.mrb[38].mxu0 %vm275_vm3, %v272_v50 }
  0x82   : > { %1973 = vmatmul.mubr.msk.f32.gmra.mrb[38].mxu1 %vm275_vm3, %v272_v50  ;;  %714 = vmatprep.mubr.f32.mxu0 %v3045_v16 }
  0x83   : > { %845 = vmatprep.mubr.f32.mxu1 %v3045_v16 }
  0x85   : > { %1961 = vmatmul.mubr.msk.f32.gmra.mrb[40].mxu0 %vm275_vm3, %v273_v51 }
  0x86   : > { %1974 = vmatmul.mubr.msk.f32.gmra.mrb[40].mxu1 %vm275_vm3, %v273_v51  ;;  %720 = vmatprep.mubr.f32.mxu0 %v3045_v16 }
  0x87   : > { %851 = vmatprep.mubr.f32.mxu1 %v3045_v16 }
  0x89   : > { %1962 = vmatmul.mubr.msk.f32.gmra.mrb[42].mxu0 %vm275_vm3, %v274_v52 }
  0x8a   : > { %1975 = vmatmul.mubr.msk.f32.gmra.mrb[42].mxu1 %vm275_vm3, %v274_v52  ;;  %966 = vmatprep.mubr.f32.mxu0 %v3045_v16 }
  0x8b   : > { %1097 = vmatprep.mubr.f32.mxu1 %v3045_v16 }
  0x8d   : > { %1978 = vmatmul.mubr.msk.f32.vlgmr.msra.gmra.mrb[44].mxu0 %vm275_vm3, %v858_v53 }
  0x8e   : > { %1991 = vmatmul.mubr.msk.f32.vlgmr.msra.gmra.mrb[44].mxu1 %vm275_vm3, %v858_v53  ;;  %2088 = vmatpush1.bf16.msk.msra.mxu0 %vm2389_vm2, %v2416_v40 }
  0x8f   : > { %2094 = vmatpush1.bf16.msk.msra.mxu1 %vm2389_vm2, %v2424_v42  ;;  %972 = vmatprep.mubr.f32.mxu0 %v3045_v16 }
  0x90   : > { %1103 = vmatprep.mubr.f32.mxu1 %v3045_v16 }
  0x91   : > { %1979 = vmatmul.mubr.msk.f32.gmra.mrb[46].mxu0 %vm275_vm3, %v859_v54 }
  0x92   : > { %1992 = vmatmul.mubr.msk.f32.gmra.mrb[46].mxu1 %vm275_vm3, %v859_v54  ;;  %978 = vmatprep.mubr.f32.mxu0 %v3045_v16 }
  0x93   : > { %1109 = vmatprep.mubr.f32.mxu1 %v3045_v16 }
  0x95   : > { %1980 = vmatmul.mubr.msk.f32.gmra.mrb[48].mxu0 %vm275_vm3, %v860_v55 }
  0x96   : > { %1993 = vmatmul.mubr.msk.f32.gmra.mrb[48].mxu1 %vm275_vm3, %v860_v55  ;;  %984 = vmatprep.mubr.f32.mxu0 %v3045_v16 }
  0x97   : > { %1115 = vmatprep.mubr.f32.mxu1 %v3045_v16 }
  0x99   : > { %1981 = vmatmul.mubr.msk.f32.gmra.mrb[50].mxu0 %vm275_vm3, %v861_v56 }
  0x9a   : > { %1994 = vmatmul.mubr.msk.f32.gmra.mrb[50].mxu1 %vm275_vm3, %v861_v56  ;;  %990 = vmatprep.mubr.f32.mxu0 %v3045_v16 }
  0x9b   : > { %1121 = vmatprep.mubr.f32.mxu1 %v3045_v16 }
  0x9d   : > { %1982 = vmatmul.mubr.msk.f32.gmra.mrb[52].mxu0 %vm275_vm3, %v862_v57 }
  0x9e   : > { %1995 = vmatmul.mubr.msk.f32.gmra.mrb[52].mxu1 %vm275_vm3, %v862_v57  ;;  %996 = vmatprep.mubr.f32.mxu0 %v3045_v16 }
  0x9f   : > { %1127 = vmatprep.mubr.f32.mxu1 %v3045_v16 }
  0xa1   : > { %1983 = vmatmul.mubr.msk.f32.gmra.mrb[54].mxu0 %vm275_vm3, %v863_v58 }
  0xa2   : > { %1996 = vmatmul.mubr.msk.f32.gmra.mrb[54].mxu1 %vm275_vm3, %v863_v58  ;;  %1002 = vmatprep.mubr.f32.mxu0 %v3045_v16 }
  0xa3   : > { %1133 = vmatprep.mubr.f32.mxu1 %v3045_v16 }
  0xa5   : > { %1984 = vmatmul.mubr.msk.f32.gmra.mrb[56].mxu0 %vm275_vm3, %v864_v59 }
  0xa6   : > { %1997 = vmatmul.mubr.msk.f32.gmra.mrb[56].mxu1 %vm275_vm3, %v864_v59  ;;  %1008 = vmatprep.mubr.f32.mxu0 %v3045_v16 }
  0xa7   : > { %1139 = vmatprep.mubr.f32.mxu1 %v3045_v16 }
  0xa9   : > { %1985 = vmatmul.mubr.msk.f32.gmra.mrb[58].mxu0 %vm275_vm3, %v865_v60 }
  0xaa   : > { %1998 = vmatmul.mubr.msk.f32.gmra.mrb[58].mxu1 %vm275_vm3, %v865_v60  ;;  %1014 = vmatprep.mubr.f32.mxu0 %v3045_v16 }
  0xab   : > { %1145 = vmatprep.mubr.f32.mxu1 %v3045_v16 }
  0xad   : > { %1986 = vmatmul.mubr.msk.f32.gmra.mrb[60].mxu0 %vm275_vm3, %v866_v61 }
  0xae   : > { %1999 = vmatmul.mubr.msk.f32.gmra.mrb[60].mxu1 %vm275_vm3, %v866_v61  ;;  %1020 = vmatprep.mubr.f32.mxu0 %v3045_v16 }
  0xaf   : > { %1151 = vmatprep.mubr.f32.mxu1 %v3045_v16 }
  0xb1   : > { %1987 = vmatmul.mubr.msk.f32.gmra.mrb[62].mxu0 %vm275_vm3, %v867_v62 }
  0xb2   : > { %2000 = vmatmul.mubr.msk.f32.gmra.mrb[62].mxu1 %vm275_vm3, %v867_v62  ;;  %1026 = vmatprep.mubr.f32.mxu0 %v3045_v16 }
  0xb3   : > { %1157 = vmatprep.mubr.f32.mxu1 %v3045_v16 }
  0xb5   : > { %1988 = vmatmul.mubr.msk.f32.gmra.mrb[64].mxu0 %vm275_vm3, %v868_v63 }
  0xb6   : > { %2001 = vmatmul.mubr.msk.f32.gmra.mrb[64].mxu1 %vm275_vm3, %v868_v63  ;;  %1228 = vmatprep.mubr.f32.mxu0 %v3045_v16 }
  0xb7   : > { %1359 = vmatprep.mubr.f32.mxu1 %v3045_v16 }
  0xb9   : > { %2004 = vmatmul.mubr.msk.f32.vlgmr.msra.gmra.mrb[66].mxu0 %vm275_vm3, %v858_v53 }
  0xba   : > { %2017 = vmatmul.mubr.msk.f32.vlgmr.msra.gmra.mrb[66].mxu1 %vm275_vm3, %v858_v53  ;;  %1234 = vmatprep.mubr.f32.mxu0 %v3045_v16 }
  0xbb   : > { %1365 = vmatprep.mubr.f32.mxu1 %v3045_v16 }
  0xbd   : > { %2005 = vmatmul.mubr.msk.f32.gmra.mrb[68].mxu0 %vm275_vm3, %v859_v54 }
  0xbe   : > { %2018 = vmatmul.mubr.msk.f32.gmra.mrb[68].mxu1 %vm275_vm3, %v859_v54  ;;  %1240 = vmatprep.mubr.f32.mxu0 %v3045_v16 }
  0xbf   : > { %1371 = vmatprep.mubr.f32.mxu1 %v3045_v16 }
  0xc1   : > { %2006 = vmatmul.mubr.msk.f32.gmra.mrb[70].mxu0 %vm275_vm3, %v860_v55 }
  0xc2   : > { %2019 = vmatmul.mubr.msk.f32.gmra.mrb[70].mxu1 %vm275_vm3, %v860_v55  ;;  %1246 = vmatprep.mubr.f32.mxu0 %v3045_v16 }
  0xc3   : > { %1377 = vmatprep.mubr.f32.mxu1 %v3045_v16 }
  0xc5   : > { %2007 = vmatmul.mubr.msk.f32.gmra.mrb[72].mxu0 %vm275_vm3, %v861_v56 }
  0xc6   : > { %2020 = vmatmul.mubr.msk.f32.gmra.mrb[72].mxu1 %vm275_vm3, %v861_v56  ;;  %1252 = vmatprep.mubr.f32.mxu0 %v3045_v16 }
  0xc7   : > { %1383 = vmatprep.mubr.f32.mxu1 %v3045_v16 }
  0xc9   : > { %2008 = vmatmul.mubr.msk.f32.gmra.mrb[74].mxu0 %vm275_vm3, %v862_v57 }
  0xca   : > { %2021 = vmatmul.mubr.msk.f32.gmra.mrb[74].mxu1 %vm275_vm3, %v862_v57  ;;  %1258 = vmatprep.mubr.f32.mxu0 %v3045_v16 }
  0xcb   : > { %1389 = vmatprep.mubr.f32.mxu1 %v3045_v16 }
  0xcd   : > { %2009 = vmatmul.mubr.msk.f32.gmra.mrb[76].mxu0 %vm275_vm3, %v863_v58 }
  0xce   : > { %2022 = vmatmul.mubr.msk.f32.gmra.mrb[76].mxu1 %vm275_vm3, %v863_v58  ;;  %1264 = vmatprep.mubr.f32.mxu0 %v3045_v16 }
  0xcf   : > { %1395 = vmatprep.mubr.f32.mxu1 %v3045_v16 }
  0xd1   : > { %2010 = vmatmul.mubr.msk.f32.gmra.mrb[78].mxu0 %vm275_vm3, %v864_v59 }
  0xd2   : > { %2023 = vmatmul.mubr.msk.f32.gmra.mrb[78].mxu1 %vm275_vm3, %v864_v59  ;;  %1270 = vmatprep.mubr.f32.mxu0 %v3045_v16 }
  0xd3   : > { %1401 = vmatprep.mubr.f32.mxu1 %v3045_v16 }
  0xd5   : > { %2011 = vmatmul.mubr.msk.f32.gmra.mrb[80].mxu0 %vm275_vm3, %v865_v60 }
  0xd6   : > { %2024 = vmatmul.mubr.msk.f32.gmra.mrb[80].mxu1 %vm275_vm3, %v865_v60  ;;  %1276 = vmatprep.mubr.f32.mxu0 %v3045_v16 }
  0xd7   : > { %1407 = vmatprep.mubr.f32.mxu1 %v3045_v16 }
  0xd9   : > { %2012 = vmatmul.mubr.msk.f32.gmra.mrb[82].mxu0 %vm275_vm3, %v866_v61 }
  0xda   : > { %2025 = vmatmul.mubr.msk.f32.gmra.mrb[82].mxu1 %vm275_vm3, %v866_v61  ;;  %1282 = vmatprep.mubr.f32.mxu0 %v3045_v16 }
  0xdb   : > { %1413 = vmatprep.mubr.f32.mxu1 %v3045_v16 }
  0xdd   : > { %2013 = vmatmul.mubr.msk.f32.gmra.mrb[84].mxu0 %vm275_vm3, %v867_v62 }
  0xde   : > { %2026 = vmatmul.mubr.msk.f32.gmra.mrb[84].mxu1 %vm275_vm3, %v867_v62  ;;  %1288 = vmatprep.mubr.f32.mxu0 %v3045_v16 }
  0xdf   : > { %1419 = vmatprep.mubr.f32.mxu1 %v3045_v16 }
  0xe1   : > { %2014 = vmatmul.mubr.msk.f32.gmra.mrb[86].mxu0 %vm275_vm3, %v868_v63 }
  0xe2   : > { %2027 = vmatmul.mubr.msk.f32.gmra.mrb[86].mxu1 %vm275_vm3, %v868_v63  ;;  %1607 = vmatprep.mubr.f32.mxu0 %v3045_v16 }
  0xe3   : > { %1678 = vmatprep.mubr.f32.mxu1 %v3045_v16 }
 0x108   : > { %v2703_v0 = vpop.f32.mrb[0].mxu0 }
 0x109   : > { %v2705_v1 = vpop.f32.mrb[0].mxu1  ;;  %v2707_v2 = vpop.f32.mrb[1].mxu0 }
 0x10a   : > { %v2709_v3 = vpop.f32.mrb[1].mxu1 }
 0x10c   : > { %v2711_v4 = vpop.f32.mrb[2].mxu0 }
 0x10d   : > { %v2713_v5 = vpop.f32.mrb[2].mxu1  ;;  %v2715_v6 = vpop.f32.mrb[3].mxu0 }
 0x10e   : > { %v2717_v7 = vpop.f32.mrb[3].mxu1 }
 0x110   : > { %v2719_v8 = vpop.f32.mrb[4].mxu0 }
 0x111   : > { %v2721_v9 = vpop.f32.mrb[4].mxu1  ;;  %v2723_v10 = vpop.f32.mrb[5].mxu0 }
 0x112   : > { %v2725_v11 = vpop.f32.mrb[5].mxu1 }
 0x114   : > { %v2727_v12 = vpop.f32.mrb[6].mxu0 }
 0x115   : > { %v2729_v13 = vpop.f32.mrb[6].mxu1  ;;  %v2731_v14 = vpop.f32.mrb[7].mxu0 }
 0x116   : > { %v2733_v15 = vpop.f32.mrb[7].mxu1 }
 0x118   : > { %v2735_v17 = vpop.f32.mrb[8].mxu0 }
 0x119   : > { %v2737_v18 = vpop.f32.mrb[8].mxu1  ;;  %v2739_v19 = vpop.f32.mrb[9].mxu0 }
 0x11a   : > { %v2741_v20 = vpop.f32.mrb[9].mxu1 }
 0x11c   : > { %v2743_v21 = vpop.f32.mrb[10].mxu0 }
 0x11d   : > { %v2745_v22 = vpop.f32.mrb[10].mxu1  ;;  %v2747_v23 = vpop.f32.mrb[11].mxu0 }
 0x11e   : > { %v2749_v24 = vpop.f32.mrb[11].mxu1 }
 0x120   : > { %v2751_v25 = vpop.f32.mrb[12].mxu0 }
 0x121   : > { %v2753_v26 = vpop.f32.mrb[12].mxu1  ;;  %v2755_v27 = vpop.f32.mrb[13].mxu0 }
 0x122   : > { %v2757_v28 = vpop.f32.mrb[13].mxu1 }
 0x124   : > { %v2759_v29 = vpop.f32.mrb[14].mxu0 }
 0x125   : > { %v2761_v30 = vpop.f32.mrb[14].mxu1  ;;  %v2763_v31 = vpop.f32.mrb[15].mxu0 }
 0x126   : > { %v2765_v32 = vpop.f32.mrb[15].mxu1 }
 0x128   : > { %v2767_v33 = vpop.f32.mrb[16].mxu0 }
 0x129   : > { %v2769_v34 = vpop.f32.mrb[16].mxu1  ;;  %v2771_v35 = vpop.f32.mrb[17].mxu0 }
 0x12a   : > { %v2773_v36 = vpop.f32.mrb[17].mxu1 }
 0x12c   : > { %v2775_v37 = vpop.f32.mrb[18].mxu0 }
 0x12d   : > { %v2777_v38 = vpop.f32.mrb[18].mxu1  ;;  %v2779_v39 = vpop.f32.mrb[19].mxu0 }
 0x12e   : > { %v2781_v40 = vpop.f32.mrb[19].mxu1 }
 0x130   : > { %v2783_v41 = vpop.f32.mrb[20].mxu0 }
 0x131   : > { %v2785_v42 = vpop.f32.mrb[20].mxu1  ;;  %v2787_v43 = vpop.f32.mrb[21].mxu0 }
 0x132   : > { %v2789_v44 = vpop.f32.mrb[21].mxu1 }
 0x134   : > { %v2791_v45 = vpop.f32.mrb[22].mxu0 }
 0x135   : > { %v2793_v46 = vpop.f32.mrb[22].mxu1  ;;  %v2795_v47 = vpop.f32.mrb[23].mxu0 }
 0x136   : > { %v2797_v48 = vpop.f32.mrb[23].mxu1 }
 0x137   : > { %3051 = vst [vmem:[#allocation6_spill] sm:$0xff] %v2797_v48 }
 0x138   : > { %v2799_v49 = vpop.f32.mrb[24].mxu0 }
 0x139   : > { %3052 = vst [vmem:[#allocation7_spill] sm:$0xff] %v2799_v49  ;;  %v2801_v50 = vpop.f32.mrb[24].mxu1  ;;  %v2803_v51 = vpop.f32.mrb[25].mxu0 }
 0x13a   : > { %3053 = vst [vmem:[#allocation8_spill] sm:$0xff] %v2801_v50  ;;  %3054 = vst [vmem:[#allocation9_spill] sm:$0xff] %v2803_v51  ;;  %v2805_v52 = vpop.f32.mrb[25].mxu1 }
 0x13b   : > { %3055 = vst [vmem:[#allocation10_spill] sm:$0xff] %v2805_v52 }
 0x13c   : > { %v2807_v53 = vpop.f32.mrb[26].mxu0 }
 0x13d   : > { %3056 = vst [vmem:[#allocation11_spill] sm:$0xff] %v2807_v53  ;;  %v2809_v54 = vpop.f32.mrb[26].mxu1  ;;  %v2811_v55 = vpop.f32.mrb[27].mxu0 }
 0x13e   : > { %3057 = vst [vmem:[#allocation12_spill] sm:$0xff] %v2809_v54  ;;  %3058 = vst [vmem:[#allocation13_spill] sm:$0xff] %v2811_v55  ;;  %v2813_v56 = vpop.f32.mrb[27].mxu1 }
 0x13f   : > { %3059 = vst [vmem:[#allocation14_spill] sm:$0xff] %v2813_v56 }
 0x140   : > { %v2815_v57 = vpop.f32.mrb[28].mxu0 }
 0x141   : > { %3060 = vst [vmem:[#allocation15_spill] sm:$0xff] %v2815_v57  ;;  %v2817_v58 = vpop.f32.mrb[28].mxu1  ;;  %v2819_v59 = vpop.f32.mrb[29].mxu0 }
 0x142   : > { %3061 = vst [vmem:[#allocation16_spill] sm:$0xff] %v2817_v58  ;;  %3062 = vst [vmem:[#allocation17_spill] sm:$0xff] %v2819_v59  ;;  %v2821_v60 = vpop.f32.mrb[29].mxu1 }
 0x143   : > { %3063 = vst [vmem:[#allocation18_spill] sm:$0xff] %v2821_v60 }
 0x144   : > { %v2823_v61 = vpop.f32.mrb[30].mxu0 }
 0x145   : > { %3064 = vst [vmem:[#allocation19_spill] sm:$0xff] %v2823_v61  ;;  %v2825_v62 = vpop.f32.mrb[30].mxu1  ;;  %v2827_v63 = vpop.f32.mrb[31].mxu0 }
 0x146   : > { %3065 = vst [vmem:[#allocation20_spill] sm:$0xff] %v2825_v62  ;;  %3066 = vst [vmem:[#allocation21_spill] sm:$0xff] %v2827_v63  ;;  %v2829_v16 = vpop.f32.mrb[31].mxu1 }
 0x147   : > { %3067 = vst [vmem:[#allocation22_spill] sm:$0xff] %v2829_v16 }
 0x148   : > { %v2831_v54 = vpop.f32.mrb[32].mxu0 }
 0x149   : > { %3068 = vst [vmem:[#allocation23_spill] sm:$0xff] %v2831_v54  ;;  %v2833_v55 = vpop.f32.mrb[32].mxu1  ;;  %v2835_v56 = vpop.f32.mrb[33].mxu0 }
 0x14a   : > { %3069 = vst [vmem:[#allocation24_spill] sm:$0xff] %v2833_v55  ;;  %3070 = vst [vmem:[#allocation25_spill] sm:$0xff] %v2835_v56  ;;  %v2837_v57 = vpop.f32.mrb[33].mxu1 }
 0x14b   : > { %3071 = vst [vmem:[#allocation26_spill] sm:$0xff] %v2837_v57 }
 0x14c   : > { %v2839_v58 = vpop.f32.mrb[34].mxu0 }
 0x14d   : > { %3072 = vst [vmem:[#allocation27_spill] sm:$0xff] %v2839_v58  ;;  %v2841_v59 = vpop.f32.mrb[34].mxu1  ;;  %v2843_v60 = vpop.f32.mrb[35].mxu0 }
 0x14e   : > { %3073 = vst [vmem:[#allocation28_spill] sm:$0xff] %v2841_v59  ;;  %3074 = vst [vmem:[#allocation29_spill] sm:$0xff] %v2843_v60  ;;  %v2845_v61 = vpop.f32.mrb[35].mxu1 }
 0x14f   : > { %3075 = vst [vmem:[#allocation30_spill] sm:$0xff] %v2845_v61 }
 0x150   : > { %v2847_v62 = vpop.f32.mrb[36].mxu0 }
 0x151   : > { %3076 = vst [vmem:[#allocation31_spill] sm:$0xff] %v2847_v62  ;;  %v2849_v63 = vpop.f32.mrb[36].mxu1  ;;  %v2851_v16 = vpop.f32.mrb[37].mxu0 }
 0x152   : > { %3077 = vst [vmem:[#allocation32_spill] sm:$0xff] %v2849_v63  ;;  %3078 = vst [vmem:[#allocation33_spill] sm:$0xff] %v2851_v16  ;;  %v2853_v54 = vpop.f32.mrb[37].mxu1 }
 0x153   : > { %3079 = vst [vmem:[#allocation34_spill] sm:$0xff] %v2853_v54 }
 0x154   : > { %v2855_v55 = vpop.f32.mrb[38].mxu0 }
 0x155   : > { %3080 = vst [vmem:[#allocation35_spill] sm:$0xff] %v2855_v55  ;;  %v2857_v56 = vpop.f32.mrb[38].mxu1  ;;  %v2859_v57 = vpop.f32.mrb[39].mxu0 }
 0x156   : > { %3081 = vst [vmem:[#allocation36_spill] sm:$0xff] %v2857_v56  ;;  %3082 = vst [vmem:[#allocation37_spill] sm:$0xff] %v2859_v57  ;;  %v2861_v58 = vpop.f32.mrb[39].mxu1 }
 0x157   : > { %3083 = vst [vmem:[#allocation38_spill] sm:$0xff] %v2861_v58 }
 0x158   : > { %v2863_v59 = vpop.f32.mrb[40].mxu0 }
 0x159   : > { %3084 = vst [vmem:[#allocation39_spill] sm:$0xff] %v2863_v59  ;;  %v2865_v60 = vpop.f32.mrb[40].mxu1  ;;  %v2867_v61 = vpop.f32.mrb[41].mxu0 }
 0x15a   : > { %3085 = vst [vmem:[#allocation40_spill] sm:$0xff] %v2865_v60  ;;  %3086 = vst [vmem:[#allocation41_spill] sm:$0xff] %v2867_v61  ;;  %v2869_v62 = vpop.f32.mrb[41].mxu1 }
 0x15b   : > { %3087 = vst [vmem:[#allocation42_spill] sm:$0xff] %v2869_v62 }
 0x15c   : > { %v2871_v63 = vpop.f32.mrb[42].mxu0 }
 0x15d   : > { %3088 = vst [vmem:[#allocation43_spill] sm:$0xff] %v2871_v63  ;;  %v2873_v16 = vpop.f32.mrb[42].mxu1  ;;  %v2875_v54 = vpop.f32.mrb[43].mxu0 }
 0x15e   : > { %3089 = vst [vmem:[#allocation44_spill] sm:$0xff] %v2873_v16  ;;  %3090 = vst [vmem:[#allocation45_spill] sm:$0xff] %v2875_v54  ;;  %v2877_v55 = vpop.f32.mrb[43].mxu1 }
 0x15f   : > { %3091 = vst [vmem:[#allocation46_spill] sm:$0xff] %v2877_v55 }
 0x160   : > { %v968_v56 = vpop.f32.mrb[44].mxu0 }
 0x161   : > { %v1426_v57 = vmul.f32 %v968_v56, %v2703_v0  ;;  %v1099_v58 = vpop.f32.mrb[44].mxu1  ;;  %v970_v53 = vpop.f32.mrb[45].mxu0 }
 0x162   : > { %v1428_v59 = vmul.f32 %v1099_v58, %v2705_v1  ;;  %v1427_v60 = vmul.f32 %v970_v53, %v2707_v2  ;;  %v1101_v61 = vpop.f32.mrb[45].mxu1 }
 0x163   : > { %v1429_v62 = vmul.f32 %v1101_v61, %v2709_v3 }
 0x164   : > { %v974_v52 = vpop.f32.mrb[46].mxu0 }
 0x165   : > { %v1434_v63 = vmul.f32 %v974_v52, %v2711_v4  ;;  %v1105_v16 = vpop.f32.mrb[46].mxu1  ;;  %v976_v51 = vpop.f32.mrb[47].mxu0 }
 0x166   : > { %v1436_v54 = vmul.f32 %v1105_v16, %v2713_v5  ;;  %v1435_v55 = vmul.f32 %v976_v51, %v2715_v6  ;;  %v1107_v50 = vpop.f32.mrb[47].mxu1 }
 0x167   : > { %v2097_v0 = vpack.c.bf16 %v1434_v63, %v1426_v57  ;;  %v1437_v56 = vmul.f32 %v1107_v50, %v2717_v7 }
 0x168   : > { %v2117_v49 = vpack.c.bf16 %v1436_v54, %v1428_v59  ;;  %v2095_v1 = vpack.c.bf16 %v1435_v55, %v1427_v60  ;;  %v980_v58 = vpop.f32.mrb[48].mxu0 }
 0x169   : > { %v2115_v2 = vpack.c.bf16 %v1437_v56, %v1429_v62  ;;  %v1442_v53 = vmul.f32 %v980_v58, %v2719_v8  ;;  %v1111_v3 = vpop.f32.mrb[48].mxu1  ;;  %v982_v61 = vpop.f32.mrb[49].mxu0 }
 0x16a   : > { %v1444_v4 = vmul.f32 %v1111_v3, %v2721_v9  ;;  %v1443_v52 = vmul.f32 %v982_v61, %v2723_v10  ;;  %v1113_v48 = vpop.f32.mrb[49].mxu1  ;;  %2096 = vmatprep.subr.bf16.mxu0 %v2095_v1 }
 0x16b   : > { %v1445_v16 = vmul.f32 %v1113_v48, %v2725_v11  ;;  %2116 = vmatprep.subr.bf16.mxu1 %v2115_v2  ;;  %2098 = vmatpush1.bf16.msra.mxu0 %v2097_v0 }
 0x16c   : > { %2118 = vmatpush1.bf16.msra.mxu1 %v2117_v49  ;;  %v986_v5 = vpop.f32.mrb[50].mxu0 }
 0x16d   : > { %v1450_v6 = vmul.f32 %v986_v5, %v2727_v12  ;;  %v1117_v7 = vpop.f32.mrb[50].mxu1  ;;  %v988_v50 = vpop.f32.mrb[51].mxu0 }
 0x16e   : > { %v1452_v8 = vmul.f32 %v1117_v7, %v2729_v13  ;;  %v1451_v51 = vmul.f32 %v988_v50, %v2731_v14  ;;  %v1119_v54 = vpop.f32.mrb[51].mxu1 }
 0x16f   : > { %v2101_v9 = vpack.c.bf16 %v1450_v6, %v1442_v53  ;;  %v1453_v10 = vmul.f32 %v1119_v54, %v2733_v15 }
 0x170   : > { %v2121_v55 = vpack.c.bf16 %v1452_v8, %v1444_v4  ;;  %v2099_v57 = vpack.c.bf16 %v1451_v51, %v1443_v52  ;;  %v992_v59 = vpop.f32.mrb[52].mxu0 }
 0x171   : > { %v2119_v11 = vpack.c.bf16 %v1453_v10, %v1445_v16  ;;  %v1458_v48 = vmul.f32 %v992_v59, %v2735_v17  ;;  %v1123_v49 = vpop.f32.mrb[52].mxu1  ;;  %v994_v60 = vpop.f32.mrb[53].mxu0 }
 0x172   : > { %v1460_v12 = vmul.f32 %v1123_v49, %v2737_v18  ;;  %v1459_v62 = vmul.f32 %v994_v60, %v2739_v19  ;;  %v1125_v63 = vpop.f32.mrb[53].mxu1  ;;  %2100 = vmatprep.subr.bf16.mxu0 %v2099_v57 }
 0x173   : > { %v1461_v13 = vmul.f32 %v1125_v63, %v2741_v20  ;;  %2120 = vmatprep.subr.bf16.mxu1 %v2119_v11  ;;  %2102 = vmatpush1.bf16.msra.mxu0 %v2101_v9 }
 0x174   : > { %2122 = vmatpush1.bf16.msra.mxu1 %v2121_v55  ;;  %v998_v14 = vpop.f32.mrb[54].mxu0 }
 0x175   : > { %v1466_v15 = vmul.f32 %v998_v14, %v2743_v21  ;;  %v1129_v0 = vpop.f32.mrb[54].mxu1  ;;  %v1000_v56 = vpop.f32.mrb[55].mxu0 }
 0x176   : > { %v1468_v17 = vmul.f32 %v1129_v0, %v2745_v22  ;;  %v1467_v1 = vmul.f32 %v1000_v56, %v2747_v23  ;;  %v1131_v58 = vpop.f32.mrb[55].mxu1 }
 0x177   : > { %v2105_v18 = vpack.c.bf16 %v1466_v15, %v1458_v48  ;;  %v1469_v19 = vmul.f32 %v1131_v58, %v2749_v24 }
 0x178   : > { %v2125_v2 = vpack.c.bf16 %v1468_v17, %v1460_v12  ;;  %v2103_v53 = vpack.c.bf16 %v1467_v1, %v1459_v62  ;;  %v1004_v3 = vpop.f32.mrb[56].mxu0 }
 0x179   : > { %v2123_v20 = vpack.c.bf16 %v1469_v19, %v1461_v13  ;;  %v1474_v61 = vmul.f32 %v1004_v3, %v2751_v25  ;;  %v1135_v4 = vpop.f32.mrb[56].mxu1  ;;  %v1006_v52 = vpop.f32.mrb[57].mxu0 }
 0x17a   : > { %v1476_v21 = vmul.f32 %v1135_v4, %v2753_v26  ;;  %v1475_v16 = vmul.f32 %v1006_v52, %v2755_v27  ;;  %v1137_v5 = vpop.f32.mrb[57].mxu1  ;;  %2104 = vmatprep.subr.bf16.mxu0 %v2103_v53  ;;  %v3096_v4 = vld [vmem:[#allocation9_spill] sm:$0xff] }
 0x17b   : > { %v1477_v22 = vmul.f32 %v1137_v5, %v2757_v28  ;;  %2124 = vmatprep.subr.bf16.mxu1 %v2123_v20  ;;  %2106 = vmatpush1.bf16.msra.mxu0 %v2105_v18  ;;  %v3092_v18 = vld [vmem:[#allocation6_spill] sm:$0xff] }
 0x17c   : > { %2126 = vmatpush1.bf16.msra.mxu1 %v2125_v2  ;;  %v1010_v23 = vpop.f32.mrb[58].mxu0  ;;  %v3093_v2 = vld [vmem:[#allocation7_spill] sm:$0xff]  ;;  %v3097_v5 = vld [vmem:[#allocation10_spill] sm:$0xff] }
 0x17d   : > { %v1482_v24 = vmul.f32 %v1010_v23, %v2759_v29  ;;  %v1141_v6 = vpop.f32.mrb[58].mxu1  ;;  %v1012_v7 = vpop.f32.mrb[59].mxu0 }
 0x17e   : > { %v1484_v25 = vmul.f32 %v1141_v6, %v2761_v30  ;;  %v1483_v50 = vmul.f32 %v1012_v7, %v2763_v31  ;;  %v1143_v8 = vpop.f32.mrb[59].mxu1 }
 0x17f   : > { %v2109_v26 = vpack.c.bf16 %v1482_v24, %v1474_v61  ;;  %v1485_v27 = vmul.f32 %v1143_v8, %v2765_v32 }
 0x180   : > { %v2129_v51 = vpack.c.bf16 %v1484_v25, %v1476_v21  ;;  %v2107_v54 = vpack.c.bf16 %v1483_v50, %v1475_v16  ;;  %v1016_v9 = vpop.f32.mrb[60].mxu0  ;;  %v3098_v25 = vld [vmem:[#allocation11_spill] sm:$0xff] }
 0x181   : > { %v2127_v28 = vpack.c.bf16 %v1485_v27, %v1477_v22  ;;  %v1490_v10 = vmul.f32 %v1016_v9, %v2767_v33  ;;  %v1147_v55 = vpop.f32.mrb[60].mxu1  ;;  %v1018_v57 = vpop.f32.mrb[61].mxu0  ;;  %v3099_v27 = vld [vmem:[#allocation12_spill] sm:$0xff] }
 0x182   : > { %v1492_v29 = vmul.f32 %v1147_v55, %v2769_v34  ;;  %v1491_v59 = vmul.f32 %v1018_v57, %v2771_v35  ;;  %v1149_v11 = vpop.f32.mrb[61].mxu1  ;;  %2108 = vmatprep.subr.bf16.mxu0 %v2107_v54  ;;  %v3100_v54 = vld [vmem:[#allocation13_spill] sm:$0xff] }
 0x183   : > { %v1493_v30 = vmul.f32 %v1149_v11, %v2773_v36  ;;  %2128 = vmatprep.subr.bf16.mxu1 %v2127_v28  ;;  %2110 = vmatpush1.bf16.msra.mxu0 %v2109_v26 }
 0x184   : > { %2130 = vmatpush1.bf16.msra.mxu1 %v2129_v51  ;;  %v1022_v31 = vpop.f32.mrb[62].mxu0 }
 0x185   : > { %v1498_v32 = vmul.f32 %v1022_v31, %v2775_v37  ;;  %v1153_v48 = vpop.f32.mrb[62].mxu1  ;;  %v1024_v49 = vpop.f32.mrb[63].mxu0  ;;  %v3103_v31 = vld [vmem:[#allocation16_spill] sm:$0xff] }
 0x186   : > { %v1500_v33 = vmul.f32 %v1153_v48, %v2777_v38  ;;  %v1499_v60 = vmul.f32 %v1024_v49, %v2779_v39  ;;  %v1155_v12 = vpop.f32.mrb[63].mxu1  ;;  %v3104_v48 = vld [vmem:[#allocation17_spill] sm:$0xff] }
 0x187   : > { %v2113_v34 = vpack.c.bf16 %v1498_v32, %v1490_v10  ;;  %v1501_v35 = vmul.f32 %v1155_v12, %v2781_v40  ;;  %v3101_v10 = vld [vmem:[#allocation14_spill] sm:$0xff] }
 0x188   : > { %v2133_v62 = vpack.c.bf16 %v1500_v33, %v1492_v29  ;;  %v2111_v63 = vpack.c.bf16 %v1499_v60, %v1491_v59  ;;  %v1028_v13 = vpop.f32.mrb[64].mxu0  ;;  %v3102_v29 = vld [vmem:[#allocation15_spill] sm:$0xff]  ;;  %v3105_v12 = vld [vmem:[#allocation18_spill] sm:$0xff] }
 0x189   : > { %v2131_v36 = vpack.c.bf16 %v1501_v35, %v1493_v30  ;;  %v1506_v14 = vmul.f32 %v1028_v13, %v2783_v41  ;;  %v1159_v15 = vpop.f32.mrb[64].mxu1  ;;  %v1030_v0 = vpop.f32.mrb[65].mxu0 }
 0x18a   : > { %v1508_v37 = vmul.f32 %v1159_v15, %v2785_v42  ;;  %v1507_v56 = vmul.f32 %v1030_v0, %v2787_v43  ;;  %v1161_v17 = vpop.f32.mrb[65].mxu1  ;;  %2112 = vmatprep.subr.bf16.mxu0 %v2111_v63  ;;  %v2929_v42 = vld [vmem:[%s3043_s3] sm:$0xff] }
 0x18b   : > { %v1509_v38 = vmul.f32 %v1161_v17, %v2789_v44  ;;  %2132 = vmatprep.subr.bf16.mxu1 %v2131_v36  ;;  %2114 = vmatpush1.bf16.msra.mxu0 %v2113_v34  ;;  %v3106_v36 = vld [vmem:[#allocation19_spill] sm:$0xff]  ;;  %v3108_v17 = vld [vmem:[#allocation21_spill] sm:$0xff] }
 0x18c   : > { %2134 = vmatpush1.bf16.msra.mxu1 %v2133_v62  ;;  %v1230_v39 = vpop.f32.mrb[66].mxu0  ;;  %2028 = vmatprep.subr.msk.mxu0 %vm309_vm0, %v1507_v56 }
 0x18d   : > { %v1430_v40 = vmul.f32 %v1230_v39, %v2791_v45  ;;  %v1361_v1 = vpop.f32.mrb[66].mxu1  ;;  %2031 = vmatprep.subr.msk.mxu1 %vm309_vm0, %v1509_v38  ;;  %v1232_v41 = vpop.f32.mrb[67].mxu0 }
 0x18e   : > { %v1432_v43 = vmul.f32 %v1361_v1, %v2793_v46  ;;  %v1431_v44 = vmul.f32 %v1232_v41, %v2795_v47  ;;  %v1363_v58 = vpop.f32.mrb[67].mxu1  ;;  %v3094_v46 = vmov 0.0   ;;  %v3095_v47 = vld [vmem:[#allocation8_spill] sm:$0xff] }
 0x18f   : > { %v1433_v19 = vmul.f32 %v1363_v58, %v3092_v18  ;;  %2029 = vmatpush1.msk.msra.mxu0 %vm309_vm0, %v1506_v14 }
 0x190   : > { %2032 = vmatpush1.msk.msra.mxu1 %vm309_vm0, %v1508_v37  ;;  %v1236_v45 = vpop.f32.mrb[68].mxu0  ;;  %2030 = vmatmul.mubr.msk.f32.vlgmr.msra.gmra.mrb[88].mxu0 %vm1515_vm4, %v2929_v42  ;;  %v3107_v37 = vld [vmem:[#allocation20_spill] sm:$0xff] }
 0x191   : > { %v1438_v53 = vmul.f32 %v1236_v45, %v3093_v2  ;;  %v1367_v3 = vpop.f32.mrb[68].mxu1  ;;  %v1238_v20 = vpop.f32.mrb[69].mxu0  ;;  %2033 = vmatmul.mubr.msk.f32.vlgmr.msra.gmra.mrb[88].mxu1 %vm1515_vm4, %v2929_v42  ;;  %1749 = vmatprep.mubr.f32.mxu0 %v3094_v46  ;;  %v3112_v2 = vld [vmem:[#allocation25_spill] sm:$0xff] }
 0x192   : > { %v1440_v61 = vmul.f32 %v1367_v3, %v3095_v47  ;;  %v1439_v52 = vmul.f32 %v1238_v20, %v3096_v4  ;;  %v1369_v21 = vpop.f32.mrb[69].mxu1  ;;  %1820 = vmatprep.mubr.f32.mxu1 %v3094_v46  ;;  %v3113_v46 = vld [vmem:[#allocation26_spill] sm:$0xff] }
 0x193   : > { %v2137_v16 = vpack.c.bf16 %v1438_v53, %v1430_v40  ;;  %v1441_v22 = vmul.f32 %v1369_v21, %v3097_v5  ;;  %v3109_v40 = vld [vmem:[#allocation22_spill] sm:$0xff] }
 0x194   : > { %v2157_v23 = vpack.c.bf16 %v1440_v61, %v1432_v43  ;;  %v2135_v24 = vpack.c.bf16 %v1439_v52, %v1431_v44  ;;  %v1242_v6 = vpop.f32.mrb[70].mxu0  ;;  %v3110_v43 = vld [vmem:[#allocation23_spill] sm:$0xff] }
 0x195   : > { %v2155_v7 = vpack.c.bf16 %v1441_v22, %v1433_v19  ;;  %v1446_v50 = vmul.f32 %v1242_v6, %v3098_v25  ;;  %v1373_v8 = vpop.f32.mrb[70].mxu1  ;;  %v1244_v26 = vpop.f32.mrb[71].mxu0  ;;  %v3111_v19 = vld [vmem:[#allocation24_spill] sm:$0xff] }
 0x196   : > { %v1448_v51 = vmul.f32 %v1373_v8, %v3099_v27  ;;  %v1447_v9 = vmul.f32 %v1244_v26, %v3100_v54  ;;  %v1375_v28 = vpop.f32.mrb[71].mxu1  ;;  %2136 = vmatprep.subr.bf16.mxu0 %v2135_v24  ;;  %v3115_v24 = vld [vmem:[#allocation28_spill] sm:$0xff]  ;;  %v3117_v8 = vld [vmem:[#allocation30_spill] sm:$0xff] }
 0x197   : > { %v1449_v55 = vmul.f32 %v1375_v28, %v3101_v10  ;;  %2156 = vmatprep.subr.bf16.mxu1 %v2155_v7  ;;  %2138 = vmatpush1.bf16.msra.mxu0 %v2137_v16  ;;  %v3114_v16 = vld [vmem:[#allocation27_spill] sm:$0xff]  ;;  %v3116_v7 = vld [vmem:[#allocation29_spill] sm:$0xff]  ;;  %v3119_v10 = vld [vmem:[#allocation32_spill] sm:$0xff] }
 0x198   : > { %2158 = vmatpush1.bf16.msra.mxu1 %v2157_v23  ;;  %v1248_v57 = vpop.f32.mrb[72].mxu0 }
 0x199   : > { %v1454_v59 = vmul.f32 %v1248_v57, %v3102_v29  ;;  %v1379_v11 = vpop.f32.mrb[72].mxu1  ;;  %v1250_v30 = vpop.f32.mrb[73].mxu0  ;;  %v3120_v57 = vld [vmem:[#allocation33_spill] sm:$0xff] }
 0x19a   : > { %v1456_v32 = vmul.f32 %v1379_v11, %v3103_v31  ;;  %v1455_v49 = vmul.f32 %v1250_v30, %v3104_v48  ;;  %v1381_v33 = vpop.f32.mrb[73].mxu1  ;;  %v3121_v30 = vld [vmem:[#allocation34_spill] sm:$0xff] }
 0x19b   : > { %v2141_v60 = vpack.c.bf16 %v1454_v59, %v1446_v50  ;;  %v1457_v34 = vmul.f32 %v1381_v33, %v3105_v12 }
 0x19c   : > { %v2161_v35 = vpack.c.bf16 %v1456_v32, %v1448_v51  ;;  %v2139_v62 = vpack.c.bf16 %v1455_v49, %v1447_v9  ;;  %v1254_v63 = vpop.f32.mrb[74].mxu0  ;;  %v3118_v51 = vld [vmem:[#allocation31_spill] sm:$0xff] }
 0x19d   : > { %v2159_v13 = vpack.c.bf16 %v1457_v34, %v1449_v55  ;;  %v1462_v14 = vmul.f32 %v1254_v63, %v3106_v36  ;;  %v1385_v15 = vpop.f32.mrb[74].mxu1  ;;  %v1256_v0 = vpop.f32.mrb[75].mxu0 }
 0x19e   : > { %v1464_v56 = vmul.f32 %v1385_v15, %v3107_v37  ;;  %v1463_v38 = vmul.f32 %v1256_v0, %v3108_v17  ;;  %v1387_v39 = vpop.f32.mrb[75].mxu1  ;;  %2140 = vmatprep.subr.bf16.mxu0 %v2139_v62  ;;  %v3123_v62 = vld [vmem:[#allocation36_spill] sm:$0xff]  ;;  %v3125_v15 = vld [vmem:[#allocation38_spill] sm:$0xff] }
 0x19f   : > { %v1465_v1 = vmul.f32 %v1387_v39, %v3109_v40  ;;  %2160 = vmatprep.subr.bf16.mxu1 %v2159_v13  ;;  %2142 = vmatpush1.bf16.msra.mxu0 %v2141_v60  ;;  %v3122_v60 = vld [vmem:[#allocation35_spill] sm:$0xff]  ;;  %v3124_v13 = vld [vmem:[#allocation37_spill] sm:$0xff]  ;;  %v3127_v40 = vld [vmem:[#allocation40_spill] sm:$0xff] }
 0x1a0   : > { %2162 = vmatpush1.bf16.msra.mxu1 %v2161_v35  ;;  %v1260_v41 = vpop.f32.mrb[76].mxu0 }
 0x1a1   : > { %v1470_v44 = vmul.f32 %v1260_v41, %v3110_v43  ;;  %v1391_v58 = vpop.f32.mrb[76].mxu1  ;;  %v1262_v18 = vpop.f32.mrb[77].mxu0  ;;  %v3128_v41 = vld [vmem:[#allocation41_spill] sm:$0xff] }
 0x1a2   : > { %v1472_v45 = vmul.f32 %v1391_v58, %v3111_v19  ;;  %v1471_v53 = vmul.f32 %v1262_v18, %v3112_v2  ;;  %v1393_v3 = vpop.f32.mrb[77].mxu1  ;;  %v3129_v18 = vld [vmem:[#allocation42_spill] sm:$0xff] }
 0x1a3   : > { %v2145_v20 = vpack.c.bf16 %v1470_v44, %v1462_v14  ;;  %v1473_v47 = vmul.f32 %v1393_v3, %v3113_v46 }
 0x1a4   : > { %v2165_v61 = vpack.c.bf16 %v1472_v45, %v1464_v56  ;;  %v2143_v4 = vpack.c.bf16 %v1471_v53, %v1463_v38  ;;  %v1266_v52 = vpop.f32.mrb[78].mxu0  ;;  %v3126_v56 = vld [vmem:[#allocation39_spill] sm:$0xff] }
 0x1a5   : > { %v2163_v21 = vpack.c.bf16 %v1473_v47, %v1465_v1  ;;  %v1478_v5 = vmul.f32 %v1266_v52, %v3114_v16  ;;  %v1397_v22 = vpop.f32.mrb[78].mxu1  ;;  %v1268_v23 = vpop.f32.mrb[79].mxu0 }
 0x1a6   : > { %v1480_v6 = vmul.f32 %v1397_v22, %v3115_v24  ;;  %v1479_v25 = vmul.f32 %v1268_v23, %v3116_v7  ;;  %v1399_v50 = vpop.f32.mrb[79].mxu1  ;;  %2144 = vmatprep.subr.bf16.mxu0 %v2143_v4  ;;  %v3131_v4 = vld [vmem:[#allocation44_spill] sm:$0xff]  ;;  %v3133_v22 = vld [vmem:[#allocation46_spill] sm:$0xff] }
 0x1a7   : > { %v1481_v26 = vmul.f32 %v1399_v50, %v3117_v8  ;;  %2164 = vmatprep.subr.bf16.mxu1 %v2163_v21  ;;  %2146 = vmatpush1.bf16.msra.mxu0 %v2145_v20  ;;  %v3130_v20 = vld [vmem:[#allocation43_spill] sm:$0xff]  ;;  %v3132_v21 = vld [vmem:[#allocation45_spill] sm:$0xff] }
 0x1a8   : > { %2166 = vmatpush1.bf16.msra.mxu1 %v2165_v61  ;;  %v1272_v27 = vpop.f32.mrb[80].mxu0 }
 0x1a9   : > { %v1486_v54 = vmul.f32 %v1272_v27, %v3118_v51  ;;  %v1403_v9 = vpop.f32.mrb[80].mxu1  ;;  %v1274_v28 = vpop.f32.mrb[81].mxu0 }
 0x1aa   : > { %v1488_v55 = vmul.f32 %v1403_v9, %v3119_v10  ;;  %v1487_v29 = vmul.f32 %v1274_v28, %v3120_v57  ;;  %v1405_v59 = vpop.f32.mrb[81].mxu1 }
 0x1ab   : > { %v2149_v11 = vpack.c.bf16 %v1486_v54, %v1478_v5  ;;  %v1489_v31 = vmul.f32 %v1405_v59, %v3121_v30 }
 0x1ac   : > { %v2169_v32 = vpack.c.bf16 %v1488_v55, %v1480_v6  ;;  %v2147_v48 = vpack.c.bf16 %v1487_v29, %v1479_v25  ;;  %v1278_v49 = vpop.f32.mrb[82].mxu0 }
 0x1ad   : > { %v2167_v33 = vpack.c.bf16 %v1489_v31, %v1481_v26  ;;  %v1494_v12 = vmul.f32 %v1278_v49, %v3122_v60  ;;  %v1409_v34 = vpop.f32.mrb[82].mxu1  ;;  %v1280_v35 = vpop.f32.mrb[83].mxu0 }
 0x1ae   : > { %v1496_v63 = vmul.f32 %v1409_v34, %v3123_v62  ;;  %v1495_v36 = vmul.f32 %v1280_v35, %v3124_v13  ;;  %v1411_v14 = vpop.f32.mrb[83].mxu1  ;;  %2148 = vmatprep.subr.bf16.mxu0 %v2147_v48 }
 0x1af   : > { %v1497_v0 = vmul.f32 %v1411_v14, %v3125_v15  ;;  %2168 = vmatprep.subr.bf16.mxu1 %v2167_v33  ;;  %2150 = vmatpush1.bf16.msra.mxu0 %v2149_v11 }
 0x1b0   : > { %2170 = vmatpush1.bf16.msra.mxu1 %v2169_v32  ;;  %v1284_v37 = vpop.f32.mrb[84].mxu0 }
 0x1b1   : > { %v1502_v17 = vmul.f32 %v1284_v37, %v3126_v56  ;;  %v1415_v38 = vpop.f32.mrb[84].mxu1  ;;  %v1286_v39 = vpop.f32.mrb[85].mxu0 }
 0x1b2   : > { %v1504_v1 = vmul.f32 %v1415_v38, %v3127_v40  ;;  %v1503_v43 = vmul.f32 %v1286_v39, %v3128_v41  ;;  %v1417_v44 = vpop.f32.mrb[85].mxu1 }
 0x1b3   : > { %v2153_v58 = vpack.c.bf16 %v1502_v17, %v1494_v12  ;;  %v1505_v19 = vmul.f32 %v1417_v44, %v3129_v18 }
 0x1b4   : > { %v2173_v45 = vpack.c.bf16 %v1504_v1, %v1496_v63  ;;  %v2151_v2 = vpack.c.bf16 %v1503_v43, %v1495_v36  ;;  %v1290_v53 = vpop.f32.mrb[86].mxu0 }
 0x1b5   : > { %v2171_v3 = vpack.c.bf16 %v1505_v19, %v1497_v0  ;;  %v1510_v46 = vmul.f32 %v1290_v53, %v3130_v20  ;;  %v1421_v47 = vpop.f32.mrb[86].mxu1  ;;  %v1292_v61 = vpop.f32.mrb[87].mxu0 }
 0x1b6   : > { %v1512_v52 = vmul.f32 %v1421_v47, %v3131_v4  ;;  %v1511_v16 = vmul.f32 %v1292_v61, %v3132_v21  ;;  %v1423_v5 = vpop.f32.mrb[87].mxu1  ;;  %2152 = vmatprep.subr.bf16.mxu0 %v2151_v2 }
 0x1b7   : > { %v1513_v23 = vmul.f32 %v1423_v5, %v3133_v22  ;;  %2172 = vmatprep.subr.bf16.mxu1 %v2171_v3  ;;  %2154 = vmatpush1.bf16.msra.mxu0 %v2153_v58 }
 0x1b8   : > { %2174 = vmatpush1.bf16.msra.mxu1 %v2173_v45  ;;  %2034 = vmatprep.subr.msk.mxu0 %vm309_vm0, %v1511_v16 }
 0x1b9   : > { %2037 = vmatprep.subr.msk.mxu1 %vm309_vm0, %v1513_v23 }
 0x1bb   : > { %2035 = vmatpush1.msk.msra.mxu0 %vm309_vm0, %v1510_v46 }
 0x1bc   : > { %2038 = vmatpush1.msk.msra.mxu1 %vm309_vm0, %v1512_v52  ;;  %2036 = vmatmul.mubr.msk.f32.vlgmr.msra.gmra.mrb[90].mxu0 %vm1515_vm4, %v2929_v42 }
 0x1bd   : > { %2039 = vmatmul.mubr.msk.f32.vlgmr.msra.gmra.mrb[90].mxu1 %vm1515_vm4, %v2929_v42 }
 0x263   : > { %v1609_v24 = vpop.f32.mrb[88].mxu0 }
 0x264   : > { %1827 = vst [vmem:[%s245_s10] sm:$0xff] %v1609_v24  ;;  %v1680_v6 = vpop.f32.mrb[88].mxu1  ;;  %v1611_v7 = vpop.f32.mrb[89].mxu0 }
 0x265   : > { %1829 = vst [vmem:[%s245_s10 + $0x10] sm:$0xff] %v1680_v6  ;;  %1828 = vst [vmem:[%s245_s10 + $0x8] sm:$0xff] %v1611_v7  ;;  %v1682_v25 = vpop.f32.mrb[89].mxu1 }
 0x266   : > { %1830 = vst [vmem:[%s245_s10 + $0x18] sm:$0xff] %v1682_v25 }
 0x28f   : > { %v1751_v50 = vpop.f32.mrb[90].mxu0 }
 0x290   : > { %1831 = vst [vmem:[%s245_s10 + $0x20] sm:$0xff] %v1751_v50  ;;  %v1822_v8 = vpop.f32.mrb[90].mxu1  ;;  %v1753_v26 = vpop.f32.mrb[91].mxu0 }
 0x291   : > { %1833 = vst [vmem:[%s245_s10 + $0x30] sm:$0xff] %v1822_v8  ;;  %1832 = vst [vmem:[%s245_s10 + $0x28] sm:$0xff] %v1753_v26  ;;  %v1824_v42 = vpop.f32.mrb[91].mxu1 }
 0x292   : > { %1834 = vst [vmem:[%s245_s10 + $0x38] sm:$0xff] %v1824_v42 }
 0x293   : > { %2229 = shalt.err (!%p2226_p5)
}
 0x294   : > { %s2230_s8 = scalar_lea.hbm %s2996_s20, 1024  ;;  %s2234_s5 = scalar_lea.hbm %s3044_s4, 2048 }
 0x295   : > { %p2231_p7 = scmp.ne.s32.totalorder %s2996_s20, %s2230_s8  ;;  %p2235_p12 = scmp.lt.u32.totalorder %s2996_s20, %s3044_s4 }
 0x296   : > { %p2236_p13 = scmp.lt.u32.totalorder %s2234_s5, %s2230_s8  ;;  %p2238_p1 = scmp.lt.u32.totalorder %s2230_s8, %s2996_s20 }
 0x297   : > { %p2232_p10 = pnand %p2231_p7, %p2346_p6 }
 0x298   : > { %p2237_p0 = por %p2236_p13, %p2235_p12 }
 0x299   : > { %p2233_p11 = pneg %p2232_p10 }
 0x29a   : > { %p2239_p2 = por %p2238_p1, %p2237_p0 }
 0x29c   : > { %p2240_p3 = pnand %p2239_p2, %p2233_p11 }
 0x29e   : > { %2243 = shalt.err (!%p2240_p3)
}
 0x29f   : > { %2175 = dma.vmem_to_hbm [thread:$0]  (%p2346_p6), %s2998_s12, 1024, %s2996_s20, %s1836_s19  }
 0x2a0 PF: > { %s1862_s9 = sand.u32 1, %s2266_s15   ;;  %p2178_p4 = pnand %p1917_p9, %p2350_p8 }
 0x2a1   : > { %s1863_s10 = scalar_lea.sflag [#allocation4], %s1862_s9 }
 0x2a2   : > { %2261 = dma.done.wait (!%p2178_p4), %s1863_s10, 1024  }
 0x2a3   : > { %2263 = vsyncadd (!%p2178_p4), %s1863_s10, 4294966272  ;;  %p14_p5 = scmp.ge.s32.totalorder %s2331_s21, 4   ;;  %s3134_s15 = smov %s2270_s16 }
 0x2a4   : > { %s3135_s16 = smov %s2274_s17  ;;  %s3136_s17 = smov %s2344_s24 }
 0x2a5   : > { %s3137_s18 = smov %s2331_s21  ;;  %16 = sbr.rel (!%p14_p5) target bundleno = 3 (0x3), region = 99 }
 0x2ac   :  { %1868 = vsyncpa [#allocation4], 1 }
 0x2ad   :  { %1870 = vsyncpa [#allocation4 + $0x1], 1 }

</bundles_post_ra>
